<compile_context>
chip_gen: v7x
topology: tpu7x:2x2x1
jax: 0.10.0
libtpu: 0.0.40
codegen_flags: <defaults>
</compile_context>

<pallas_src>
import jax
import jax.numpy as jnp
from jax.experimental import pallas as pl
from jax.experimental.pallas import tpu as pltpu

_LANE = 128
_SLAB_COLS = 512          # lane width of the 2D slab (multiple of 128)
_MAX_TILE_ROWS = 512      # rows per block: 512*512*4B = 1 MiB per buffer
_SMALL_N = 1024           # below this, a single un-tiled block is cheapest


def _linear_kernel(p_ref, x_ref, o_ref):
    # p_ref: (2,) f32 in SMEM -> [weight, bias]  (cheap sld, no VMEM traffic).
    # x_ref, o_ref: f32 tiles in VMEM.  Linear(1, 1) is a single VPU FMA; keep
    # f32 end to end (also correct on v5e, which has no bf16 VPU path).
    w = p_ref[0]
    b = p_ref[1]
    o_ref[...] = x_ref[...] * w + b


def _forward_single_block(x_row: jax.Array, params: jax.Array) -> jax.Array:
    """Whole-array path for small N. x_row: (1, n) f32, no pad / no slice."""
    return pl.pallas_call(
        _linear_kernel,
        out_shape=jax.ShapeDtypeStruct(x_row.shape, x_row.dtype),
        in_specs=[
            pl.BlockSpec(memory_space=pltpu.MemorySpace.SMEM),   # params (2,)
            pl.BlockSpec(memory_space=pltpu.MemorySpace.VMEM),   # x, full array
        ],
        out_specs=pl.BlockSpec(memory_space=pltpu.MemorySpace.VMEM),
    )(params, x_row)


def _forward_tiled(x2d: jax.Array, params: jax.Array, tile_rows: int) -> jax.Array:
    """Tiled streaming path for large N. x2d: (R, C) f32, C a multiple of 128."""
    rows, cols = x2d.shape
    tile_rows = min(tile_rows, rows)
    grid = (pl.cdiv(rows, tile_rows),)
    return pl.pallas_call(
        _linear_kernel,
        out_shape=jax.ShapeDtypeStruct((rows, cols), x2d.dtype),
        grid=grid,
        in_specs=[
            # Parameters: the same (2,) SMEM block every grid step.
            pl.BlockSpec((2,), lambda i: (0,), memory_space=pltpu.MemorySpace.SMEM),
            pl.BlockSpec((tile_rows, cols), lambda i: (i, 0)),
        ],
        out_specs=pl.BlockSpec((tile_rows, cols), lambda i: (i, 0)),
        compiler_params=pltpu.CompilerParams(
            dimension_semantics=("parallel",),     # megacore sharding on v7x
            vmem_limit_bytes=32 * 1024 * 1024,     # safe budget on v5e/v6e/v7x
        ),
    )(params, x2d)


def linear_forward(
    x: jax.Array,
    weight: jax.Array,
    bias: jax.Array,
    *,
    tile_rows: int = _MAX_TILE_ROWS,
) -> jax.Array:
    """x: (N, 1) f32, weight: (1, 1) f32, bias: (1,) f32 -> (N, 1) f32."""
    n, in_f = x.shape
    out_f = weight.shape[0]
    assert in_f == 1 and out_f == 1, "elementwise path is specific to nn.Linear(1, 1)"

    params = jnp.concatenate(
        [weight.reshape(-1), bias.reshape(-1)]
    ).astype(x.dtype)                                  # (2,) = [w, b]
    flat = x.reshape(-1)                               # contiguous -> free bitcast

    if n <= _SMALL_N:
        # Single full-extent block: no pad, no slice, no grid.
        y_row = _forward_single_block(flat.reshape(1, n), params)
        return y_row.reshape(n, out_f)

    # Sublane + lane-dense slab (R, 512); pad only when N % 512 != 0.
    cols = _SLAB_COLS
    rows = pl.cdiv(n, cols)
    pad = rows * cols - n
    if pad:
        flat = jnp.pad(flat, (0, pad))
    y2d = _forward_tiled(flat.reshape(rows, cols), params, tile_rows)
    y = y2d.reshape(-1)
    if pad:
        y = y[:n]
    return y.reshape(n, out_f)


if __name__ == "__main__":
    # Input matching the PyTorch script: torch.arange(0, 1, 0.02).unsqueeze(1) -> (50, 1)
    x = jnp.arange(0.0, 1.0, 0.02, dtype=jnp.float32).reshape(-1, 1)

    # Deterministic parameter init for nn.Linear(1, 1): weight (1, 1), bias (1,)
    key = jax.random.PRNGKey(0)
    kw, kb = jax.random.split(key)
    bound = 1.0  # U(-1/sqrt(in_features), 1/sqrt(in_features)), in_features = 1
    weight = jax.random.uniform(kw, (1, 1), jnp.float32, -bound, bound)
    bias = jax.random.uniform(kb, (1,), jnp.float32, -bound, bound)

    # Small-N path (the module's literal input): single un-tiled Pallas block.
    y = jax.block_until_ready(linear_forward(x, weight, bias))
    y_ref = x @ weight.T + bias
    assert y.shape == (x.shape[0], 1)
    assert jnp.allclose(y, y_ref, atol=1e-6, rtol=1e-6)

    # Also exercise the tiled / gridded streaming path (still a small shape):
    # N = 8192 -> (16, 512) slab, tile_rows=8 -> grid of 2 "parallel" steps.
    x_big = jax.random.uniform(jax.random.PRNGKey(1), (8192, 1), jnp.float32)
    y_big = jax.block_until_ready(linear_forward(x_big, weight, bias, tile_rows=8))
    y_big_ref = x_big @ weight.T + bias
    assert jnp.allclose(y_big, y_big_ref, atol=1e-6, rtol=1e-6)

    print("KERNEL_OK")
</pallas_src>

<mosaic_0001>
module attributes {stable_mosaic.version = 11 : i64} {
  func.func @_linear_kernel(%arg0: memref<2xf32, #tpu.memory_space<smem>>, %arg1: memref<1x50xf32, #tpu.memory_space<vmem>>, %arg2: memref<1x50xf32, #tpu.memory_space<vmem>>) attributes {dimension_semantics = [], scalar_prefetch = 0 : i64, scratch_operands = 0 : i64, tpu.core_type = #tpu.core_type<tc>} {
    %c0 = arith.constant 0 : index
    %0 = memref.load %arg0[%c0] : memref<2xf32, #tpu.memory_space<smem>>
    %c1 = arith.constant 1 : index
    %1 = memref.load %arg0[%c1] : memref<2xf32, #tpu.memory_space<smem>>
    %c0_0 = arith.constant 0 : index
    %c0_1 = arith.constant 0 : index
    %2 = vector.load %arg1[%c0_0, %c0_1] : memref<1x50xf32, #tpu.memory_space<vmem>>, vector<1x50xf32>
    %3 = vector.broadcast %0 : f32 to vector<1x50xf32>
    %4 = arith.mulf %2, %3 : vector<1x50xf32>
    %5 = vector.broadcast %1 : f32 to vector<1x50xf32>
    %6 = arith.addf %4, %5 : vector<1x50xf32>
    %c0_2 = arith.constant 0 : index
    %c0_3 = arith.constant 0 : index
    %7 = vector.load %arg2[%c0_2, %c0_3] : memref<1x50xf32, #tpu.memory_space<vmem>>, vector<1x50xf32>
    tpu.vector_store %arg2[%c0_2, %c0_3], %6 {strides = array<i32>} : memref<1x50xf32, #tpu.memory_space<vmem>>, vector<1x50xf32>,
    return
  }
}

</mosaic_0001>

<bundles_post_ra>
// kernel: tpu_custom_call.1
= control target key start
LH: loop header
LB: loop body
LE: loop exit
PB: predicated region body
PF: predicated region fallthrough
CT: control target
= control target key end

     0   :  { %7 = vsyncpa [#allocation4], 0  ;;  %s130_s0 = inlined_call_operand.hbm [shape: f32[2], index: 0, kind: input, shape index: {}]   ;;  %s131_s1 = inlined_call_operand.vmem [shape: f32[1,50], index: 1, kind: input, shape index: {}]   ;;  %s132_s2 = inlined_call_operand.hbm [shape: f32[1,50], index: 2, kind: output, shape index: {}]  }
   0x1   :  { %8 = vsyncpa [#allocation3], 0  ;;  %s50_s11 = scalar_lea.hbm %s130_s0, 16 }
   0x2   :  { %p51_p0 = scmp.ne.s32.totalorder %s130_s0, %s50_s11  ;;  %p54_p1 = scmp.lt.u32.totalorder %s50_s11, %s130_s0 }
   0x4   :  { %p56_p2 = pnand %p54_p1, %p51_p0 }
   0x6   :  { %59 = shalt.err (!%p56_p2)
}
   0x7   :  { %s86_s16 = smov [#allocation2]  }
   0x8   :  { %16 = dma.hbm_to_smem %s130_s0, 16, %s86_s16, [#allocation4]  }
   0x9   :  { %82 = dma.done.wait [#allocation4], 16  }
   0xa   :  { %83 = vsyncadd [#allocation4], 4294967280 }
   0xb   :  { %22 = sfence }
   0xc   :  { %s23_s19 = sld [smem:[#allocation2]]  ;;  %s47_s20 = sld [smem:[#allocation2 + $0x1]]  ;;  %v25_v0 = vld [vmem:[%s131_s1] sm:$0x1]  ;;  %vm30_vm0 = vcmask 401408  }
   0xd   :  { %s87_s23 = smov [#allocation5]  }
   0xe   :  { %s38_s24 = sshll.u32 %s87_s23, 4  ;;  %s39_s24 = int_to_ptr.vmem [resolvable:$true] %s38_s24 }
   0xf   :  { %s60_s25 = scalar_lea.vmem %s39_s24, 16  ;;  %s64_s0 = scalar_lea.vmem %s39_s24, 32 }
  0x10   :  { %p61_p3 = scmp.ne.s32.totalorder %s39_s24, %s60_s25  ;;  %p65_p4 = scmp.lt.s32.totalorder %s39_s24, %s39_s24 }
  0x11   :  { %p66_p5 = scmp.lt.s32.totalorder %s64_s0, %s60_s25 }
  0x12   :  { %v26_v1 = vstv %s23_s19  ;;  %v28_v2 = vstv %s47_s20 }
  0x13   :  { %v27_v3 = vmul.f32 %v26_v1, %v25_v0  ;;  %p67_p6 = por %p66_p5, %p65_p4 }
  0x15   :  { %v29_v4 = vadd.f32 %v28_v2, %v27_v3  ;;  %p68_p7 = pnand %p67_p6, %p61_p3 }
  0x17   :  { %31 = vst.msk [vmem:[#allocation5] sm:$0x1] %vm30_vm0, %v29_v4 }
  0x18   :  { %71 = shalt.err (!%p68_p7)
}
  0x19   :  { %s72_s1 = scalar_lea.hbm %s132_s2, 16 }
  0x1a   :  { %p73_p8 = scmp.ne.s32.totalorder %s132_s2, %s72_s1  ;;  %p76_p9 = scmp.lt.u32.totalorder %s72_s1, %s132_s2 }
  0x1c   :  { %p78_p10 = pnand %p76_p9, %p73_p8 }
  0x1e   :  { %81 = shalt.err (!%p78_p10)
}
  0x1f   :  { %41 = dma.vmem_to_hbm [thread:$0]  %s39_s24, 16, %s132_s2, [#allocation3]  }
  0x20   :  { %84 = dma.done.wait [#allocation3], 16  }
  0x21   :  { %85 = vsyncadd [#allocation3], 4294967280 }
  0x22   :  { %45 = vsyncpa [#allocation3], 1 }
  0x23   :  { %46 = vsyncpa [#allocation4], 1 }

</bundles_post_ra>
